<compile_context>
chip_gen: v6e
topology: v6e:2x2x1
jax: 0.10.0
libtpu: 0.0.40
codegen_flags: <defaults>
</compile_context>

<pallas_src>
import math
import functools

import jax
import jax.numpy as jnp
from jax.experimental import pallas as pl
from jax.experimental.pallas import tpu as pltpu


# ----------------------------------------------------------------------------
# Kernels
# ----------------------------------------------------------------------------
def _noise_linear_kernel(x_ref, mu_w_ref, sig_w_ref, eps_j_ref, eps_i_ref,
                         b_ref, o_ref):
    """Train path. Output tile is the accumulator (resident across k)."""
    k = pl.program_id(2)

    # k == 0: seed the resident output tile with the fused bias.
    @pl.when(k == 0)
    def _():
        b = b_ref[...]                                     # (3, tn): mu_b / sig_b / f(eps_b)
        bias = b[0:1, :] + b[1:2, :] * b[2:3, :]           # (1, tn)
        o_ref[...] = jnp.broadcast_to(bias, o_ref.shape)

    # Rank-1 factorized noise rebuilt in-register (VPU, hidden under the MXU),
    # mu + sigma*eps fused in f32 (v5e has no bf16 VPU arithmetic).
    eps_w = eps_j_ref[...] * eps_i_ref[...]                # (tn,1)*(1,tk) -> (tn,tk)
    w = (mu_w_ref[...].astype(jnp.float32)
         + sig_w_ref[...].astype(jnp.float32) * eps_w)     # (tn, tk) f32

    lhs = x_ref[...]
    if mu_w_ref.dtype == jnp.bfloat16:
        # bf16 streaming path: feed the MXU in bf16, accumulate in f32.
        w = w.astype(jnp.bfloat16)
        lhs = lhs.astype(jnp.bfloat16)

    # Contract last dims of x (tm,tk) and w (tn,tk): weight keeps its native
    # (out_ch, in_ch) layout, no wrapper-side transpose (would re-stream HBM).
    # TODO(synk): verify in the Mosaic dump (pl.lower_as_mlir) that no per-step
    # XLU vxpose of the weight tile is emitted; if it is, store the weights
    # (in_ch, out_ch) once and switch to the plain (m,k)x(k,n) contraction.
    o_ref[...] += jax.lax.dot_general(
        lhs, w,
        dimension_numbers=(((1,), (1,)), ((), ())),
        preferred_element_type=jnp.float32)


def _plain_linear_kernel(x_ref, mu_w_ref, mu_b_ref, o_ref):
    """Eval path (is_train=False): only mu_weight / mu_bias are streamed."""
    k = pl.program_id(2)

    @pl.when(k == 0)
    def _():
        o_ref[...] = jnp.broadcast_to(mu_b_ref[...], o_ref.shape)

    lhs = x_ref[...]
    w = mu_w_ref[...]
    if mu_w_ref.dtype == jnp.bfloat16:
        lhs = lhs.astype(jnp.bfloat16)
    o_ref[...] += jax.lax.dot_general(
        lhs, w,
        dimension_numbers=(((1,), (1,)), ((), ())),
        preferred_element_type=jnp.float32)


# ----------------------------------------------------------------------------
# Tiling / padding plan
# ----------------------------------------------------------------------------
# Tile preferences: lane/MXU-friendly on v5e (4x128x128) and v6e/v7x (2x256x256).
# Double-buffered f32 footprint at (512, 256, 512) is ~5 MiB -> fits all chips.
_TM, _TN, _TK = 512, 256, 512
_COMPILER_PARAMS = pltpu.CompilerParams(
    dimension_semantics=("parallel", "parallel", "arbitrary"),
    vmem_limit_bytes=48 * 1024 * 1024,   # below v7x's 64 MiB physical ceiling
)


def _round_up(x, m):
    return ((x + m - 1) // m) * m


def _plan(dim, pref, align):
    """Pick a tile (multiple of `align`) and the zero-padded dim it divides."""
    tile = pref if dim >= pref else _round_up(dim, align)
    return tile, _round_up(dim, tile)


def _grid_and_pads(batch, out_ch, in_ch):
    tm, pm = _plan(batch, _TM, 8)      # sublane-aligned
    tn, pn = _plan(out_ch, _TN, 128)   # lane-aligned -> unmasked vst
    tk, pk = _plan(in_ch, _TK, 128)
    # v7x megacore: keep >=2 parallel tiles when the padded problem allows it.
    if (pm // tm) * (pn // tn) < 2 and pn >= 256:
        tn = 128
    grid = (pm // tm, pn // tn, pk // tk)
    return (tm, tn, tk), (pm, pn, pk), grid


# ----------------------------------------------------------------------------
# Wrappers
# ----------------------------------------------------------------------------
@functools.partial(jax.jit, static_argnames=("use_bf16",))
def noise_linear(x, mu_w, sig_w, mu_b, sig_b, eps_i, eps_j, eps_b, *,
                 use_bf16=False):
    """Train path: y = x @ (mu_w + sig_w * outer(eps_j, eps_i)).T + (mu_b + sig_b*eps_b)."""
    batch, in_ch = x.shape
    out_ch = mu_w.shape[0]
    (tm, tn, tk), (pm, pn, pk), grid = _grid_and_pads(batch, out_ch, in_ch)

    # NOTE: in production store mu_w / sig_w in bf16 so this cast is free; the
    # win is the halved HBM weight traffic inside the kernel.
    w_dtype = jnp.bfloat16 if use_bf16 else mu_w.dtype
    mu_w_p = jnp.pad(mu_w, ((0, pn - out_ch), (0, pk - in_ch))).astype(w_dtype)
    sig_w_p = jnp.pad(sig_w, ((0, pn - out_ch), (0, pk - in_ch))).astype(w_dtype)
    x_p = jnp.pad(x, ((0, pm - batch), (0, pk - in_ch)))

    eps_i2 = jnp.pad(eps_i, (0, pk - in_ch)).reshape(1, pk)       # f(eps_i)
    eps_j2 = jnp.pad(eps_j, (0, pn - out_ch)).reshape(pn, 1)      # f(eps_j)
    b_stack = jnp.pad(jnp.stack([mu_b, sig_b, eps_b]),            # (3, pn)
                      ((0, 0), (0, pn - out_ch)))

    out = pl.pallas_call(
        _noise_linear_kernel,
        out_shape=jax.ShapeDtypeStruct((pm, pn), jnp.float32),
        grid=grid,
        in_specs=[
            pl.BlockSpec((tm, tk), lambda i, j, k: (i, k)),   # x
            pl.BlockSpec((tn, tk), lambda i, j, k: (j, k)),   # mu_weight
            pl.BlockSpec((tn, tk), lambda i, j, k: (j, k)),   # sigma_weight
            pl.BlockSpec((tn, 1), lambda i, j, k: (j, 0)),    # f(eps_j)
            pl.BlockSpec((1, tk), lambda i, j, k: (0, k)),    # f(eps_i)
            pl.BlockSpec((3, tn), lambda i, j, k: (0, j)),    # [mu_b; sig_b; f(eps_b)]
        ],
        out_specs=pl.BlockSpec((tm, tn), lambda i, j, k: (i, j)),
        compiler_params=_COMPILER_PARAMS,
    )(x_p, mu_w_p, sig_w_p, eps_j2, eps_i2, b_stack)
    return out[:batch, :out_ch].astype(x.dtype)


@functools.partial(jax.jit, static_argnames=("use_bf16",))
def linear_eval(x, mu_w, mu_b, *, use_bf16=False):
    """Eval path (is_train=False): y = x @ mu_w.T + mu_b, no noise traffic."""
    batch, in_ch = x.shape
    out_ch = mu_w.shape[0]
    (tm, tn, tk), (pm, pn, pk), grid = _grid_and_pads(batch, out_ch, in_ch)

    w_dtype = jnp.bfloat16 if use_bf16 else mu_w.dtype
    mu_w_p = jnp.pad(mu_w, ((0, pn - out_ch), (0, pk - in_ch))).astype(w_dtype)
    x_p = jnp.pad(x, ((0, pm - batch), (0, pk - in_ch)))
    mu_b2 = jnp.pad(mu_b, (0, pn - out_ch)).reshape(1, pn)

    out = pl.pallas_call(
        _plain_linear_kernel,
        out_shape=jax.ShapeDtypeStruct((pm, pn), jnp.float32),
        grid=grid,
        in_specs=[
            pl.BlockSpec((tm, tk), lambda i, j, k: (i, k)),   # x
            pl.BlockSpec((tn, tk), lambda i, j, k: (j, k)),   # mu_weight
            pl.BlockSpec((1, tn), lambda i, j, k: (0, j)),    # mu_bias
        ],
        out_specs=pl.BlockSpec((tm, tn), lambda i, j, k: (i, j)),
        compiler_params=_COMPILER_PARAMS,
    )(x_p, mu_w_p, mu_b2)
    return out[:batch, :out_ch].astype(x.dtype)


# ----------------------------------------------------------------------------
# Parameter / noise construction (plain JAX glue, mirrors reset_par/reset_noise)
# ----------------------------------------------------------------------------
def _f_noise(v):
    # f(v) = sign(v) * sqrt(|v|)   (NoisyNet factorized-noise transform)
    return jnp.sign(v) * jnp.sqrt(jnp.abs(v))


def make_params(key, in_ch, out_ch):
    """Deterministic parameter init matching reset_par()."""
    std = 1.0 / math.sqrt(in_ch)
    k1, k2 = jax.random.split(key, 2)
    mu_weight = jax.random.uniform(k1, (out_ch, in_ch), jnp.float32, -std, std)
    mu_bias = jax.random.uniform(k2, (out_ch,), jnp.float32, -std, std)
    sigma_weight = jnp.full((out_ch, in_ch), 0.5 / math.sqrt(in_ch), jnp.float32)
    sigma_bias = jnp.full((out_ch,), 0.5 / math.sqrt(in_ch), jnp.float32)
    return mu_weight, mu_bias, sigma_weight, sigma_bias


def make_noise(key, in_ch, out_ch):
    """Deterministic reset_noise(); returns the factors, never the outer product."""
    ki, kj, kb = jax.random.split(key, 3)
    eps_i = _f_noise(jax.random.normal(ki, (in_ch,), jnp.float32))   # f(eps_i)
    eps_j = _f_noise(jax.random.normal(kj, (out_ch,), jnp.float32))  # f(eps_j)
    eps_b = _f_noise(jax.random.normal(kb, (out_ch,), jnp.float32))  # f(eps_b)
    return eps_i, eps_j, eps_b


# ----------------------------------------------------------------------------
# Main
# ----------------------------------------------------------------------------
if __name__ == "__main__":
    in_ch, out_ch, batch = 32, 16, 8

    key = jax.random.PRNGKey(0)
    k_par, k_noise, k_x = jax.random.split(key, 3)

    mu_w, mu_b, sig_w, sig_b = make_params(k_par, in_ch, out_ch)
    eps_i, eps_j, eps_b = make_noise(k_noise, in_ch, out_ch)
    x = jax.random.normal(k_x, (batch, in_ch), jnp.float32)

    # Pure-JAX references.
    w_ref = mu_w + sig_w * jnp.outer(eps_j, eps_i)
    b_ref = mu_b + sig_b * eps_b
    y_train_ref = x @ w_ref.T + b_ref
    y_eval_ref = x @ mu_w.T + mu_b

    # Train path (is_train=True), exact f32.
    y_train = jax.block_until_ready(
        noise_linear(x, mu_w, sig_w, mu_b, sig_b, eps_i, eps_j, eps_b))
    # Eval path (is_train=False), exact f32.
    y_eval = jax.block_until_ready(linear_eval(x, mu_w, mu_b))
    # Train path with bf16 weight streaming (halved HBM traffic; looser numerics).
    y_train_bf16 = jax.block_until_ready(
        noise_linear(x, mu_w, sig_w, mu_b, sig_b, eps_i, eps_j, eps_b,
                     use_bf16=True))

    assert y_train.shape == (batch, out_ch)
    assert y_eval.shape == (batch, out_ch)
    assert jnp.allclose(y_train, y_train_ref, atol=1e-5, rtol=1e-5)
    assert jnp.allclose(y_eval, y_eval_ref, atol=1e-5, rtol=1e-5)
    assert jnp.allclose(y_train_bf16, y_train_ref, atol=1e-1, rtol=1e-1)

    print("KERNEL_OK")
</pallas_src>

<mosaic_0001>
module attributes {stable_mosaic.version = 11 : i64} {
  func.func @_noise_linear_kernel(%arg0: i32, %arg1: i32, %arg2: i32, %arg3: memref<8x128xf32, #tpu.memory_space<vmem>>, %arg4: memref<128x128xf32, #tpu.memory_space<vmem>>, %arg5: memref<128x128xf32, #tpu.memory_space<vmem>>, %arg6: memref<128x1xf32, #tpu.memory_space<vmem>>, %arg7: memref<1x128xf32, #tpu.memory_space<vmem>>, %arg8: memref<3x128xf32, #tpu.memory_space<vmem>>, %arg9: memref<8x128xf32, #tpu.memory_space<vmem>>) attributes {dimension_semantics = [#tpu.dimension_semantics<parallel>, #tpu.dimension_semantics<parallel>, #tpu.dimension_semantics<arbitrary>], iteration_bounds = array<i64: 1, 1, 1>, scalar_prefetch = 0 : i64, scratch_operands = 0 : i64, tpu.core_type = #tpu.core_type<tc>, window_params = [{transform_indices = @transform_0, window_bounds = array<i64: 8, 128>}, {transform_indices = @transform_1, window_bounds = array<i64: 128, 128>}, {transform_indices = @transform_2, window_bounds = array<i64: 128, 128>}, {transform_indices = @transform_3, window_bounds = array<i64: 128, 1>}, {transform_indices = @transform_4, window_bounds = array<i64: 1, 128>}, {transform_indices = @transform_5, window_bounds = array<i64: 3, 128>}, {transform_indices = @transform_6, window_bounds = array<i64: 8, 128>}]} {
    %c0_i32 = arith.constant 0 : i32
    %0 = arith.cmpi eq, %arg2, %c0_i32 : i32
    %1 = arith.extui %0 : i1 to i32
    %c0_i32_0 = arith.constant 0 : i32
    %2 = arith.cmpi ne, %1, %c0_i32_0 : i32
    scf.if %2 {
      %c0_14 = arith.constant 0 : index
      %c0_15 = arith.constant 0 : index
      %17 = vector.load %arg8[%c0_14, %c0_15] : memref<3x128xf32, #tpu.memory_space<vmem>>, vector<3x128xf32>
      %18 = vector.extract_strided_slice %17 {offsets = [0, 0], sizes = [1, 128], strides = [1, 1]} : vector<3x128xf32> to vector<1x128xf32>
      %19 = vector.extract_strided_slice %17 {offsets = [1, 0], sizes = [1, 128], strides = [1, 1]} : vector<3x128xf32> to vector<1x128xf32>
      %20 = vector.extract_strided_slice %17 {offsets = [2, 0], sizes = [1, 128], strides = [1, 1]} : vector<3x128xf32> to vector<1x128xf32>
      %21 = arith.mulf %19, %20 : vector<1x128xf32>
      %22 = arith.addf %18, %21 : vector<1x128xf32>
      %23 = vector.shape_cast %22 : vector<1x128xf32> to vector<1x128xf32>
      %24 = vector.broadcast %23 : vector<1x128xf32> to vector<8x128xf32>
      %c0_16 = arith.constant 0 : index
      %c0_17 = arith.constant 0 : index
      %25 = vector.load %arg9[%c0_16, %c0_17] : memref<8x128xf32, #tpu.memory_space<vmem>>, vector<8x128xf32>
      tpu.vector_store %arg9[%c0_16, %c0_17], %24 {strides = array<i32>} : memref<8x128xf32, #tpu.memory_space<vmem>>, vector<8x128xf32>,
    } else {
    }
    %c0 = arith.constant 0 : index
    %c0_1 = arith.constant 0 : index
    %3 = vector.load %arg6[%c0, %c0_1] : memref<128x1xf32, #tpu.memory_space<vmem>>, vector<128x1xf32>
    %c0_2 = arith.constant 0 : index
    %c0_3 = arith.constant 0 : index
    %4 = vector.load %arg7[%c0_2, %c0_3] : memref<1x128xf32, #tpu.memory_space<vmem>>, vector<1x128xf32>
    %5 = vector.broadcast %3 : vector<128x1xf32> to vector<128x128xf32>
    %6 = vector.broadcast %4 : vector<1x128xf32> to vector<128x128xf32>
    %7 = arith.mulf %5, %6 : vector<128x128xf32>
    %c0_4 = arith.constant 0 : index
    %c0_5 = arith.constant 0 : index
    %8 = vector.load %arg4[%c0_4, %c0_5] : memref<128x128xf32, #tpu.memory_space<vmem>>, vector<128x128xf32>
    %c0_6 = arith.constant 0 : index
    %c0_7 = arith.constant 0 : index
    %9 = vector.load %arg5[%c0_6, %c0_7] : memref<128x128xf32, #tpu.memory_space<vmem>>, vector<128x128xf32>
    %10 = arith.mulf %9, %7 : vector<128x128xf32>
    %11 = arith.addf %8, %10 : vector<128x128xf32>
    %c0_8 = arith.constant 0 : index
    %c0_9 = arith.constant 0 : index
    %12 = vector.load %arg3[%c0_8, %c0_9] : memref<8x128xf32, #tpu.memory_space<vmem>>, vector<8x128xf32>
    %c0_10 = arith.constant 0 : index
    %c0_11 = arith.constant 0 : index
    %13 = vector.load %arg9[%c0_10, %c0_11] : memref<8x128xf32, #tpu.memory_space<vmem>>, vector<8x128xf32>
    %cst = arith.constant dense<0.000000e+00> : vector<8x128xf32>
    %14 = tpu.matmul %12, %11, %cst {dimension_numbers = #tpu.dot_dimension_numbers<[1], [1], [0], [0], [0, 0, 1, 0], [], []>} : vector<8x128xf32>, vector<128x128xf32>, vector<8x128xf32> -> vector<8x128xf32>
    %15 = arith.addf %13, %14 : vector<8x128xf32>
    %c0_12 = arith.constant 0 : index
    %c0_13 = arith.constant 0 : index
    %16 = vector.load %arg9[%c0_12, %c0_13] : memref<8x128xf32, #tpu.memory_space<vmem>>, vector<8x128xf32>
    tpu.vector_store %arg9[%c0_12, %c0_13], %15 {strides = array<i32>} : memref<8x128xf32, #tpu.memory_space<vmem>>, vector<8x128xf32>,
    return
  }
  func.func @transform_0(%arg0: i32, %arg1: i32, %arg2: i32) -> (i32, i32) {
    %c0_i32 = arith.constant 0 : i32
    return %arg0, %arg2 : i32, i32
  }
  func.func @transform_1(%arg0: i32, %arg1: i32, %arg2: i32) -> (i32, i32) {
    %c0_i32 = arith.constant 0 : i32
    return %arg1, %arg2 : i32, i32
  }
  func.func @transform_2(%arg0: i32, %arg1: i32, %arg2: i32) -> (i32, i32) {
    %c0_i32 = arith.constant 0 : i32
    return %arg1, %arg2 : i32, i32
  }
  func.func @transform_3(%arg0: i32, %arg1: i32, %arg2: i32) -> (i32, i32) {
    %c0_i32 = arith.constant 0 : i32
    %c0_i32_0 = arith.constant 0 : i32
    return %arg1, %c0_i32 : i32, i32
  }
  func.func @transform_4(%arg0: i32, %arg1: i32, %arg2: i32) -> (i32, i32) {
    %c0_i32 = arith.constant 0 : i32
    %c0_i32_0 = arith.constant 0 : i32
    return %c0_i32, %arg2 : i32, i32
  }
  func.func @transform_5(%arg0: i32, %arg1: i32, %arg2: i32) -> (i32, i32) {
    %c0_i32 = arith.constant 0 : i32
    %c0_i32_0 = arith.constant 0 : i32
    return %c0_i32, %arg1 : i32, i32
  }
  func.func @transform_6(%arg0: i32, %arg1: i32, %arg2: i32) -> (i32, i32) {
    %c0_i32 = arith.constant 0 : i32
    return %arg0, %arg1 : i32, i32
  }
}

</mosaic_0001>

<bundles_post_ra>
// kernel: noise_linear.1
= control target key start
LH: loop header
LB: loop body
LE: loop exit
PB: predicated region body
PF: predicated region fallthrough
CT: control target
= control target key end

     0   :  { %v394_v2 = vmov 0   ;;  %v395_v5 = vmov 0.0   ;;  %s624_s0 = inlined_call_operand.vmem [shape: f32[8,128], index: 0, kind: input, shape index: {}]   ;;  %s625_s1 = inlined_call_operand.vmem [shape: f32[128,128], index: 1, kind: input, shape index: {}]   ;;  %s626_s2 = inlined_call_operand.vmem [shape: f32[128,128], index: 2, kind: input, shape index: {}]   ;;  %s627_s3 = inlined_call_operand.vmem [shape: f32[128,1], index: 3, kind: input, shape index: {}]   ;;  %s628_s4 = inlined_call_operand.vmem [shape: f32[1,128], index: 4, kind: input, shape index: {}]   ;;  %s629_s5 = inlined_call_operand.vmem [shape: f32[3,128], index: 5, kind: input, shape index: {}]   ;;  %s630_s6 = inlined_call_operand.hbm [shape: f32[8,128], index: 6, kind: output, shape index: {}]  }
   0x1   :  { %v57_v0 = vld [vmem:[%s627_s3 + $0x78] sm:$0xff]  ;;  %v55_v1 = vld [vmem:[%s627_s3 + $0x68] sm:$0xff]  ;;  %371 = vset.pattern.permute.xlu1 %v394_v2  ;;  %370 = vset.pattern.permute.xlu0 %v394_v2  ;;  %v56_v3 = vld [vmem:[%s627_s3 + $0x70] sm:$0xff] }
   0x2   :  { %136 = vperm.xlu0 %370, %v57_v0   ;;  %126 = vperm.xlu1 %371, %v55_v1   ;;  %v54_v4 = vld [vmem:[%s627_s3 + $0x60] sm:$0xff]  ;;  %v53_v6 = vld [vmem:[%s627_s3 + $0x58] sm:$0xff]  ;;  %v52_v7 = vld [vmem:[%s627_s3 + $0x50] sm:$0xff] }
   0x3   :  { %331 = vmatprep.subr.mxu0 %v395_v5 }
   0x6   :  { %131 = vperm.xlu0 %370, %v56_v3   ;;  %121 = vperm.xlu1 %371, %v54_v4  }
   0x7   :  { %11 = vsyncpa [#allocation3], 0  ;;  %v51_v8 = vld [vmem:[%s627_s3 + $0x48] sm:$0xff]  ;;  %v50_v9 = vld [vmem:[%s627_s3 + $0x40] sm:$0xff]  ;;  %vm396_vm0 = vmmov 0  }
   0x8   :  { %v49_v10 = vld [vmem:[%s627_s3 + $0x38] sm:$0xff]  ;;  %v48_v11 = vld [vmem:[%s627_s3 + $0x30] sm:$0xff]  ;;  %v47_v12 = vld [vmem:[%s627_s3 + $0x28] sm:$0xff]  ;;  %363 = vmatprep.mubr.msk.f32.mxu0 %vm396_vm0, %v395_v5 }
   0x9   :  { %v46_v13 = vld [vmem:[%s627_s3 + $0x20] sm:$0xff]  ;;  %v45_v14 = vld [vmem:[%s627_s3 + $0x18] sm:$0xff]  ;;  %v44_v15 = vld [vmem:[%s627_s3 + $0x10] sm:$0xff] }
   0xa   :  { %116 = vperm.xlu0 %370, %v53_v6   ;;  %111 = vperm.xlu1 %371, %v52_v7   ;;  %v43_v16 = vld [vmem:[%s627_s3 + $0x8] sm:$0xff]  ;;  %v42_v17 = vld [vmem:[%s627_s3] sm:$0xff]  ;;  %v192_v19 = vld [vmem:[%s626_s2 + $0x78] sm:$0xff] }
   0xb   :  { %v486_v18 = vld [vmem:[%s628_s4] ss:$0 sm:$0xff]  ;;  %v176_v23 = vld [vmem:[%s625_s1 + $0x78] sm:$0xff]  ;;  %v190_v26 = vld [vmem:[%s626_s2 + $0x68] sm:$0xff] }
   0xc   :  { %v191_v27 = vld [vmem:[%s626_s2 + $0x70] sm:$0xff]  ;;  %v174_v35 = vld [vmem:[%s625_s1 + $0x68] sm:$0xff]  ;;  %v189_v38 = vld [vmem:[%s626_s2 + $0x60] sm:$0xff] }
   0xd   :  { %v175_v31 = vld [vmem:[%s625_s1 + $0x70] sm:$0xff]  ;;  %v188_v43 = vld [vmem:[%s626_s2 + $0x58] sm:$0xff]  ;;  %v173_v45 = vld [vmem:[%s625_s1 + $0x60] sm:$0xff] }
   0xe   :  { %106 = vperm.xlu0 %370, %v51_v8   ;;  %101 = vperm.xlu1 %371, %v50_v9   ;;  %v187_v49 = vld [vmem:[%s626_s2 + $0x50] sm:$0xff]  ;;  %v172_v51 = vld [vmem:[%s625_s1 + $0x58] sm:$0xff]  ;;  %v186_v55 = vld [vmem:[%s626_s2 + $0x48] sm:$0xff] }
   0xf   :  { %v171_v57 = vld [vmem:[%s625_s1 + $0x50] sm:$0xff]  ;;  %v185_v61 = vld [vmem:[%s626_s2 + $0x40] sm:$0xff]  ;;  %v170_v63 = vld [vmem:[%s625_s1 + $0x48] sm:$0xff] }
  0x10   :  { %v184_v3 = vld [vmem:[%s626_s2 + $0x38] sm:$0xff]  ;;  %v169_v6 = vld [vmem:[%s625_s1 + $0x40] sm:$0xff] }
  0x12   :  { %96 = vperm.xlu0 %370, %v49_v10   ;;  %91 = vperm.xlu1 %371, %v48_v11   ;;  %v183_v10 = vld [vmem:[%s626_s2 + $0x30] sm:$0xff] }
  0x16   :  { %86 = vperm.xlu0 %370, %v47_v12   ;;  %81 = vperm.xlu1 %371, %v46_v13   ;;  %v168_v12 = vld [vmem:[%s625_s1 + $0x38] sm:$0xff] }
  0x1a   :  { %76 = vperm.xlu0 %370, %v45_v14   ;;  %71 = vperm.xlu1 %371, %v44_v15  }
  0x1e   :  { %66 = vperm.xlu0 %370, %v43_v16   ;;  %61 = vperm.xlu1 %371, %v42_v17   ;;  %v182_v16 = vld [vmem:[%s626_s2 + $0x28] sm:$0xff] }
  0x7d   :  { %v137_v20 = vpop.permute.xlu0 %136  ;;  %v127_v22 = vpop.permute.xlu1 %126 }
  0x7e   :  { %v160_v21 = vmul.f32 %v486_v18, %v137_v20  ;;  %v158_v25 = vmul.f32 %v486_v18, %v127_v22 }
  0x80   :  { %v208_v24 = vmul.f32 %v192_v19, %v160_v21  ;;  %v206_v32 = vmul.f32 %v190_v26, %v158_v25  ;;  %v167_v19 = vld [vmem:[%s625_s1 + $0x30] sm:$0xff]  ;;  %v166_v25 = vld [vmem:[%s625_s1 + $0x28] sm:$0xff] }
  0x81   :  { %v132_v28 = vpop.permute.xlu0 %131  ;;  %v122_v34 = vpop.permute.xlu1 %121 }
  0x82   :  { %v159_v29 = vmul.f32 %v486_v18, %v132_v28  ;;  %v224_v30 = vadd.f32 %v208_v24, %v176_v23  ;;  %v157_v36 = vmul.f32 %v486_v18, %v122_v34  ;;  %v222_v40 = vadd.f32 %v206_v32, %v174_v35  ;;  %v181_v23 = vld [vmem:[%s626_s2 + $0x20] sm:$0xff]  ;;  %v179_v35 = vld [vmem:[%s626_s2 + $0x10] sm:$0xff] }
  0x84   :  { %v207_v33 = vmul.f32 %v191_v27, %v159_v29  ;;  %332 = vmatpush3.xpose.msra.mxu0 %v224_v30  ;;  %v205_v41 = vmul.f32 %v189_v38, %v157_v36  ;;  %v180_v29 = vld [vmem:[%s626_s2 + $0x18] sm:$0xff] }
  0x85   :  { %333 = vmatprep.subr.mxu0 %v395_v5  ;;  %v117_v39 = vpop.permute.xlu0 %116  ;;  %v112_v44 = vpop.permute.xlu1 %111 }
  0x86   :  { %v223_v37 = vadd.f32 %v207_v33, %v175_v31  ;;  %v156_v42 = vmul.f32 %v486_v18, %v117_v39  ;;  %v155_v47 = vmul.f32 %v486_v18, %v112_v44  ;;  %v221_v48 = vadd.f32 %v205_v41, %v173_v45  ;;  %v165_v31 = vld [vmem:[%s625_s1 + $0x20] sm:$0xff]  ;;  %v178_v41 = vld [vmem:[%s626_s2 + $0x8] sm:$0xff] }
  0x88   :  { %334 = vmatpush3.xpose.msra.mxu0 %v223_v37  ;;  %v204_v46 = vmul.f32 %v188_v43, %v156_v42  ;;  %v203_v52 = vmul.f32 %v187_v49, %v155_v47  ;;  %v164_v37 = vld [vmem:[%s625_s1 + $0x18] sm:$0xff]  ;;  %v163_v43 = vld [vmem:[%s625_s1 + $0x10] sm:$0xff]  ;;  %v177_v47 = vld [vmem:[%s626_s2] sm:$0xff] }
  0x89   :  { %335 = vmatprep.subr.mxu0 %v395_v5  ;;  %v107_v50 = vpop.permute.xlu0 %106  ;;  %v102_v56 = vpop.permute.xlu1 %101 }
  0x8a   :  { %v154_v53 = vmul.f32 %v486_v18, %v107_v50  ;;  %v220_v54 = vadd.f32 %v204_v46, %v172_v51  ;;  %v153_v59 = vmul.f32 %v486_v18, %v102_v56  ;;  %v219_v60 = vadd.f32 %v203_v52, %v171_v57  ;;  %v161_v51 = vld [vmem:[%s625_s1] sm:$0xff] }
  0x8b   :  { %v225_v52 = vld [vmem:[%s624_s0] sm:$0xff]  ;;  %v37_v56 = vlaneseq }
  0x8c   :  { %336 = vmatpush3.xpose.msra.mxu0 %v222_v40  ;;  %v202_v58 = vmul.f32 %v186_v55, %v154_v53  ;;  %v201_v0 = vmul.f32 %v185_v61, %v153_v59  ;;  %v28_v53 = vld [vmem:[%s629_s5] sm:$0x7] }
  0x8d   :  { %337 = vmatprep.subr.mxu0 %v395_v5  ;;  %v97_v62 = vpop.permute.xlu0 %96  ;;  %v92_v4 = vpop.permute.xlu1 %91 }
  0x8e   :  { %v152_v1 = vmul.f32 %v486_v18, %v97_v62  ;;  %v218_v2 = vadd.f32 %v202_v58, %v170_v63  ;;  %v151_v8 = vmul.f32 %v486_v18, %v92_v4  ;;  %v217_v9 = vadd.f32 %v201_v0, %v169_v6 }
  0x8f   :  { %v38_v58 = vshrl.u32 %v37_v56, 7 }
  0x90   :  { %338 = vmatpush3.xpose.msra.mxu0 %v221_v48  ;;  %v200_v7 = vmul.f32 %v184_v3, %v152_v1  ;;  %v199_v13 = vmul.f32 %v183_v10, %v151_v8  ;;  %v162_v48 = vld [vmem:[%s625_s1 + $0x8] sm:$0xff]  ;;  %s397_s1 = smov [#allocation2]  }
  0x91   :  { %339 = vmatprep.subr.mxu0 %v395_v5  ;;  %v87_v11 = vpop.permute.xlu0 %86  ;;  %v82_v17 = vpop.permute.xlu1 %81  ;;  %s305_s20 = sshll.u32 %s397_s1, 4  ;;  %s306_s20 = int_to_ptr.vmem [resolvable:$true] %s305_s20 }
  0x92   :  { %v150_v14 = vmul.f32 %v486_v18, %v87_v11  ;;  %v216_v15 = vadd.f32 %v200_v7, %v168_v12  ;;  %v149_v21 = vmul.f32 %v486_v18, %v82_v17  ;;  %v215_v22 = vadd.f32 %v199_v13, %v167_v19  ;;  %s372_s0 = scalar_lea.vmem %s306_s20, 128  ;;  %p377_p1 = scmp.lt.s32.totalorder %s306_s20, %s306_s20 }
  0x93   :  { %p373_p0 = scmp.ne.s32.totalorder %s306_s20, %s372_s0  ;;  %p378_p2 = scmp.lt.s32.totalorder %s372_s0, %s372_s0 }
  0x94   :  { %340 = vmatpush3.xpose.msra.mxu0 %v220_v54  ;;  %v198_v20 = vmul.f32 %v182_v16, %v150_v14  ;;  %v197_v26 = vmul.f32 %v181_v23, %v149_v21  ;;  %v30_v54 = vrot.slane %v28_v53, 1 }
  0x95   :  { %341 = vmatprep.subr.mxu0 %v395_v5  ;;  %v77_v24 = vpop.permute.xlu0 %76  ;;  %v72_v30 = vpop.permute.xlu1 %71  ;;  %p379_p3 = por %p378_p2, %p377_p1 }
  0x96   :  { %v148_v27 = vmul.f32 %v486_v18, %v77_v24  ;;  %v214_v28 = vadd.f32 %v198_v20, %v166_v25  ;;  %v147_v33 = vmul.f32 %v486_v18, %v72_v30  ;;  %v213_v34 = vadd.f32 %v197_v26, %v165_v31 }
  0x97   :  { %v32_v55 = vmul.f32 %v30_v54, %v28_v53  ;;  %p380_p4 = pnand %p379_p3, %p373_p0 }
  0x98   :  { %342 = vmatpush3.xpose.msra.mxu0 %v219_v60  ;;  %v196_v32 = vmul.f32 %v180_v29, %v148_v27  ;;  %v195_v38 = vmul.f32 %v179_v35, %v147_v33  ;;  %v39_v60 = vsub.s32 0, %v38_v58 }
  0x99   :  { %343 = vmatprep.subr.mxu0 %v395_v5  ;;  %v67_v36 = vpop.permute.xlu0 %66  ;;  %v62_v42 = vpop.permute.xlu1 %61  ;;  %v34_v57 = vrot.slane %v32_v55, 1 }
  0x9a   :  { %v146_v39 = vmul.f32 %v486_v18, %v67_v36  ;;  %v212_v40 = vadd.f32 %v196_v32, %v164_v37  ;;  %v145_v45 = vmul.f32 %v486_v18, %v62_v42  ;;  %v211_v46 = vadd.f32 %v195_v38, %v163_v43 }
  0x9b   :  { %v36_v59 = vadd.f32 %v34_v57, %v28_v53 }
  0x9c   :  { %344 = vmatpush3.xpose.msra.mxu0 %v218_v2  ;;  %v194_v44 = vmul.f32 %v178_v41, %v146_v39  ;;  %v193_v49 = vmul.f32 %v177_v47, %v145_v45 }
  0x9d   :  { %345 = vmatprep.subr.mxu0 %v395_v5  ;;  %v40_v61 = vrot.slane %v36_v59, %v39_v60 }
  0x9e   :  { %v210_v50 = vadd.f32 %v194_v44, %v162_v48  ;;  %v209_v18 = vadd.f32 %v193_v49, %v161_v51 }
  0xa0   :  { %346 = vmatpush3.xpose.msra.mxu0 %v217_v9 }
  0xa1   :  { %347 = vmatprep.subr.mxu0 %v395_v5 }
  0xa4   :  { %348 = vmatpush3.xpose.msra.mxu0 %v216_v15 }
  0xa5   :  { %349 = vmatprep.subr.mxu0 %v395_v5 }
  0xa8   :  { %350 = vmatpush3.xpose.msra.mxu0 %v215_v22 }
  0xa9   :  { %351 = vmatprep.subr.mxu0 %v395_v5 }
  0xac   :  { %352 = vmatpush3.xpose.msra.mxu0 %v214_v28 }
  0xad   :  { %353 = vmatprep.subr.mxu0 %v395_v5 }
  0xb0   :  { %354 = vmatpush3.xpose.msra.mxu0 %v213_v34 }
  0xb1   :  { %355 = vmatprep.subr.mxu0 %v395_v5 }
  0xb4   :  { %356 = vmatpush3.xpose.msra.mxu0 %v212_v40 }
  0xb5   :  { %357 = vmatprep.subr.mxu0 %v395_v5 }
  0xb8   :  { %358 = vmatpush3.xpose.msra.mxu0 %v211_v46 }
  0xb9   :  { %359 = vmatprep.subr.mxu0 %v395_v5 }
  0xbc   :  { %360 = vmatpush3.xpose.msra.mxu0 %v210_v50 }
  0xbd   :  { %361 = vmatprep.subr.mxu0 %v395_v5 }
  0xc0   :  { %362 = vmatpush3.xpose.msra.mxu0 %v209_v18 }
  0xc3   :  { %364 = vmatmul.mubr.f32.vlgmr.msra.gmra.mxu0 %v225_v52 }
 0x183   :  { %v293_v5 = vpop.f32.mrf.mxu0 }
 0x184   :  { %v297_v62 = vadd.f32 %v293_v5, %v40_v61 }
 0x185   :  { %v365_v63 = vpop.f32.mrf.mxu0 }
 0x186   :  { %298 = vst [vmem:[#allocation2] sm:$0xff] %v297_v62 }
 0x187   :  { %383 = shalt.err (!%p380_p4)
}
 0x188   :  { %308 = dma.vmem_to_hbm [thread:$0]  %s306_s20, 128, %s630_s6, [#allocation3]  }
 0x189   :  { %392 = dma.done.wait [#allocation3], 128  }
 0x18a   :  { %393 = vsyncadd [#allocation3], 4294967168 }
 0x18b   :  { %312 = vsyncpa [#allocation3], 1 }

</bundles_post_ra>
